<compile_context>
chip_gen: v5e
topology: v5e:2x2
jax: 0.10.0
libtpu: 0.0.40
codegen_flags: <defaults>
</compile_context>

<pallas_src>
import functools
import math

import jax
import jax.numpy as jnp
from jax import lax
from jax.experimental import pallas as pl
from jax.experimental.pallas import tpu as pltpu


def _round_up(x, m):
    return ((x + m - 1) // m) * m


# ----------------------------------------------------------------------------
# PositionalEncoding buffer (PyTorch __init__): 2-D (max_len, d_model)
# ----------------------------------------------------------------------------
def make_pe_table(d_model, max_len=5000):
    position = jnp.arange(0, max_len, dtype=jnp.float32)[:, None]          # (L, 1)
    div_term = jnp.exp(jnp.arange(0, d_model, 2, dtype=jnp.float32)
                       * (-math.log(10000.0) / d_model))                   # (D/2,)
    angles = position * div_term                                           # (L, D/2)
    pe = jnp.zeros((max_len, d_model), jnp.float32)
    pe = pe.at[:, 0::2].set(jnp.sin(angles))
    pe = pe.at[:, 1::2].set(jnp.cos(angles))
    return pe                                                              # (L, D)


# ----------------------------------------------------------------------------
# Kernel 1: fused  Linear(embed->d_model) + repeat(seq_len) + PositionalEncoding
# ----------------------------------------------------------------------------
def _proj_repeat_pe_kernel(x_ref, w_ref, b_ref, pe_ref, o_ref):
    # x: (B, E), w: (E, D), b: (1, D), pe: (S_pad, D) -> o: (B, S, D)
    B, S, _ = o_ref.shape
    proj = jnp.dot(x_ref[...], w_ref[...],
                   preferred_element_type=jnp.float32) + b_ref[...]        # (B, D)
    pe = pe_ref[:S, :]                                                     # (S, D)
    for b in range(B):                                                     # B static & tiny
        o_ref[b, :, :] = (proj[b:b + 1, :] + pe).astype(o_ref.dtype)


def proj_repeat_pe(x, w, b, pe_full, *, seq_len, use_pe=True):
    """x: (B, E) -> (B, seq_len, D) = repeat(x @ w + b, seq_len) + pe[:seq_len]."""
    B, E = x.shape
    D = w.shape[1]
    max_len = pe_full.shape[0]
    s_pad = _round_up(seq_len, 8)                 # sublane-aligned pe window
    assert seq_len <= max_len and s_pad <= max_len, "seq_len exceeds pe max_len"

    pe_in = pe_full.astype(x.dtype)               # match x dtype (review fix)
    if not use_pe:
        pe_in = jnp.zeros_like(pe_in)

    return pl.pallas_call(
        _proj_repeat_pe_kernel,
        out_shape=jax.ShapeDtypeStruct((B, seq_len, D), x.dtype),
        grid=(1,),
        in_specs=[
            pl.BlockSpec((B, E), lambda i: (0, 0)),
            pl.BlockSpec((E, D), lambda i: (0, 0)),
            pl.BlockSpec((1, D), lambda i: (0, 0)),
            # only the first s_pad rows of pe_full are DMA'd (no XLA pre-slice)
            pl.BlockSpec((s_pad, D), lambda i: (0, 0)),
        ],
        out_specs=pl.BlockSpec((B, seq_len, D), lambda i: (0, 0, 0)),
    )(x, w, b, pe_in)


# ----------------------------------------------------------------------------
# Kernel 2: fused multi-head attention (one batch element per grid step)
# ----------------------------------------------------------------------------
def _mha_kernel(q_ref, k_ref, v_ref,
                wq_ref, wk_ref, wv_ref,
                bq_ref, bk_ref, bv_ref,
                wo_ref, bo_ref, o_ref, *, num_heads):
    # q: (Sq, D); k, v: (Sk, D); head-major weights: wq/wk/wv (H, D, hd),
    # bq/bk/bv (H, 1, hd), wo (H, hd, D), bo (1, D).
    q = q_ref[...]
    k = k_ref[...]
    v = v_ref[...]
    sq, d = q.shape
    hd = d // num_heads
    scale = 1.0 / math.sqrt(hd)

    acc = jnp.zeros((sq, d), jnp.float32)
    for h in range(num_heads):                    # static, unrolled
        qh = (jnp.dot(q, wq_ref[h], preferred_element_type=jnp.float32)
              + bq_ref[h]) * scale                                          # (Sq, hd)
        kh = jnp.dot(k, wk_ref[h], preferred_element_type=jnp.float32) + bk_ref[h]
        vh = jnp.dot(v, wv_ref[h], preferred_element_type=jnp.float32) + bv_ref[h]
        # scores = qh @ kh^T  (contract on head_dim, no explicit transpose)
        s = lax.dot_general(qh, kh, (((1,), (1,)), ((), ())),
                            preferred_element_type=jnp.float32)             # (Sq, Sk)
        m = jnp.max(s, axis=-1, keepdims=True)
        e = jnp.exp(s - m)
        p = e / jnp.sum(e, axis=-1, keepdims=True)
        oh = jnp.dot(p, vh, preferred_element_type=jnp.float32)             # (Sq, hd)
        acc = acc + jnp.dot(oh, wo_ref[h], preferred_element_type=jnp.float32)
    o_ref[...] = (acc + bo_ref[...]).astype(o_ref.dtype)


def _split_heads_w(w, num_heads):   # (Din, D) -> (H, Din, hd)  (column block h)
    d_in, d = w.shape
    hd = d // num_heads
    return w.reshape(d_in, num_heads, hd).transpose(1, 0, 2)


def _split_heads_b(b, num_heads):   # (1, D) -> (H, 1, hd)
    _, d = b.shape
    hd = d // num_heads
    return b.reshape(1, num_heads, hd).transpose(1, 0, 2)


def _split_heads_wo(w, num_heads):  # (D, Dout) -> (H, hd, Dout)  (row block h)
    d, d_out = w.shape
    hd = d // num_heads
    return w.reshape(num_heads, hd, d_out)


def multihead_attention(q, k, v, p, *, num_heads):
    """q: (B, Sq, D); k, v: (B, Sk, D) -> (B, Sq, D). One fused kernel per call."""
    B, Sq, D = q.shape
    Sk = k.shape[1]
    assert D % num_heads == 0
    hd = D // num_heads

    wq = _split_heads_w(p["wq"], num_heads)
    wk = _split_heads_w(p["wk"], num_heads)
    wv = _split_heads_w(p["wv"], num_heads)
    bq = _split_heads_b(p["bq"], num_heads)
    bk = _split_heads_b(p["bk"], num_heads)
    bv = _split_heads_b(p["bv"], num_heads)
    wo = _split_heads_wo(p["wo"], num_heads)
    bo = p["bo"]

    def seq_spec(s):
        return pl.BlockSpec((None, s, D), lambda b: (b, 0, 0))
    w_spec = pl.BlockSpec((num_heads, D, hd), lambda b: (0, 0, 0))
    b_spec = pl.BlockSpec((num_heads, 1, hd), lambda b: (0, 0, 0))
    wo_spec = pl.BlockSpec((num_heads, hd, D), lambda b: (0, 0, 0))
    bo_spec = pl.BlockSpec((1, D), lambda b: (0, 0))

    return pl.pallas_call(
        functools.partial(_mha_kernel, num_heads=num_heads),
        out_shape=jax.ShapeDtypeStruct((B, Sq, D), q.dtype),
        grid=(B,),
        in_specs=[seq_spec(Sq), seq_spec(Sk), seq_spec(Sk),
                  w_spec, w_spec, w_spec,
                  b_spec, b_spec, b_spec,
                  wo_spec, bo_spec],
        out_specs=pl.BlockSpec((None, Sq, D), lambda b: (b, 0, 0)),
        compiler_params=pltpu.CompilerParams(
            dimension_semantics=("parallel",)),      # 2 TCs on v7x share the batch
    )(q, k, v, wq, wk, wv, bq, bk, bv, wo, bo)


# ----------------------------------------------------------------------------
# Kernel 3: fused mean-over-seq + concat + Linear -> ReLU -> Linear classifier
# ----------------------------------------------------------------------------
def _classifier_kernel(hsa_ref, hcr_ref, csa_ref, ccr_ref,
                       w1_ref, b1_ref, w2_ref, b2_ref, o_ref):
    S = hsa_ref.shape[1]
    inv_s = 1.0 / S

    def seq_mean(ref):
        return jnp.sum(ref[...].astype(jnp.float32), axis=1) * inv_s        # (B, D)

    feat = jnp.concatenate(
        [seq_mean(hsa_ref), seq_mean(hcr_ref), seq_mean(csa_ref), seq_mean(ccr_ref)],
        axis=-1)                                                            # (B, 4D)
    hid = jnp.maximum(
        jnp.dot(feat, w1_ref[...], preferred_element_type=jnp.float32) + b1_ref[...],
        0.0)
    logits = jnp.dot(hid, w2_ref[...], preferred_element_type=jnp.float32) + b2_ref[...]
    o_ref[...] = logits.astype(o_ref.dtype)


def classifier(h_sa, h_cr, c_sa, c_cr, p):
    B = h_sa.shape[0]
    C = p["w2"].shape[1]
    return pl.pallas_call(                           # whole arrays -> VMEM, single step
        _classifier_kernel,
        out_shape=jax.ShapeDtypeStruct((B, C), h_sa.dtype),
    )(h_sa, h_cr, c_sa, c_cr, p["w1"], p["b1"], p["w2"], p["b2"])


# ----------------------------------------------------------------------------
# Full model forward
# ----------------------------------------------------------------------------
def attention_based_model_forward(params, E_a, E_c, E_h, *, num_heads,
                                  seq_len=5, use_positional_encoding=True):
    ap, cp, hp = params["audio_proj"], params["caption_proj"], params["hypothesis_proj"]
    A = proj_repeat_pe(E_a, ap["w"], ap["b"], params["pe"],
                       seq_len=seq_len, use_pe=use_positional_encoding)
    C = proj_repeat_pe(E_c, cp["w"], cp["b"], params["pe"],
                       seq_len=seq_len, use_pe=use_positional_encoding)
    H = proj_repeat_pe(E_h, hp["w"], hp["b"], params["pe"],
                       seq_len=seq_len, use_pe=use_positional_encoding)

    A_sa = multihead_attention(A, A, A, params["audio_self_attn"], num_heads=num_heads)
    C_sa = multihead_attention(C, C, C, params["caption_self_attn"], num_heads=num_heads)
    H_sa = multihead_attention(H, H, H, params["hypothesis_self_attn"], num_heads=num_heads)

    H_cr = multihead_attention(H_sa, A_sa, A_sa, params["cross_attn"], num_heads=num_heads)
    C_cr = multihead_attention(C_sa, A_sa, A_sa, params["cross_attn"], num_heads=num_heads)

    return classifier(H_sa, H_cr, C_sa, C_cr, params["classifier"])


# ----------------------------------------------------------------------------
# Parameter construction + pure-JAX reference (for correctness check)
# ----------------------------------------------------------------------------
def init_params(key, *, embed_dim, d_model, hidden_dim, num_classes, max_len):
    ks = jax.random.split(key, 8)

    def linear(k, din, dout, scale=0.1):
        kw, kb = jax.random.split(k)
        return {"w": scale * jax.random.normal(kw, (din, dout), jnp.float32),
                "b": scale * jax.random.normal(kb, (1, dout), jnp.float32)}

    def mha(k, d, scale=0.1):
        names = ("q", "k", "v", "o")
        out = {}
        for name, kk in zip(names, jax.random.split(k, 4)):
            k1, k2 = jax.random.split(kk)
            out["w" + name] = scale * jax.random.normal(k1, (d, d), jnp.float32)
            out["b" + name] = scale * jax.random.normal(k2, (1, d), jnp.float32)
        return out

    k1, k2 = jax.random.split(ks[7])
    l1 = linear(k1, 4 * d_model, hidden_dim)
    l2 = linear(k2, hidden_dim, num_classes)
    return {
        "audio_proj": linear(ks[0], embed_dim, d_model),
        "caption_proj": linear(ks[1], embed_dim, d_model),
        "hypothesis_proj": linear(ks[2], embed_dim, d_model),
        "audio_self_attn": mha(ks[3], d_model),
        "caption_self_attn": mha(ks[4], d_model),
        "hypothesis_self_attn": mha(ks[5], d_model),
        "cross_attn": mha(ks[6], d_model),
        "classifier": {"w1": l1["w"], "b1": l1["b"], "w2": l2["w"], "b2": l2["b"]},
        "pe": make_pe_table(d_model, max_len),
    }


def reference_forward(params, E_a, E_c, E_h, *, num_heads, seq_len,
                      use_positional_encoding):
    d_model = params["audio_proj"]["w"].shape[1]
    pe = params["pe"][:seq_len]

    def proj_rep(x, p):
        y = x @ p["w"] + p["b"]
        y = jnp.broadcast_to(y[:, None, :], (x.shape[0], seq_len, d_model))
        if use_positional_encoding:
            y = y + pe[None, :, :]
        return y

    def mha(q, k, v, p):
        B, Sq, D = q.shape
        Sk = k.shape[1]
        hd = D // num_heads
        scale = 1.0 / math.sqrt(hd)
        Q = (q @ p["wq"] + p["bq"]).reshape(B, Sq, num_heads, hd) * scale
        K = (k @ p["wk"] + p["bk"]).reshape(B, Sk, num_heads, hd)
        V = (v @ p["wv"] + p["bv"]).reshape(B, Sk, num_heads, hd)
        s = jnp.einsum("bqhd,bkhd->bhqk", Q, K)
        a = jax.nn.softmax(s, axis=-1)
        ctx = jnp.einsum("bhqk,bkhd->bqhd", a, V).reshape(B, Sq, D)
        return ctx @ p["wo"] + p["bo"]

    A = proj_rep(E_a, params["audio_proj"])
    C = proj_rep(E_c, params["caption_proj"])
    H = proj_rep(E_h, params["hypothesis_proj"])
    A_sa = mha(A, A, A, params["audio_self_attn"])
    C_sa = mha(C, C, C, params["caption_self_attn"])
    H_sa = mha(H, H, H, params["hypothesis_self_attn"])
    H_cr = mha(H_sa, A_sa, A_sa, params["cross_attn"])
    C_cr = mha(C_sa, A_sa, A_sa, params["cross_attn"])
    feat = jnp.concatenate(
        [H_sa.mean(1), H_cr.mean(1), C_sa.mean(1), C_cr.mean(1)], axis=-1)
    pc = params["classifier"]
    hid = jax.nn.relu(feat @ pc["w1"] + pc["b1"])
    return hid @ pc["w2"] + pc["b2"]


if __name__ == "__main__":
    B = 2
    EMBED_DIM = 32
    D_MODEL = 32          # attention_dim
    NUM_HEADS = 4
    HIDDEN_DIM = 64
    NUM_CLASSES = 3
    SEQ_LEN = 5           # hard-coded in the PyTorch forward
    MAX_LEN = 64

    key = jax.random.PRNGKey(0)
    kp, ka, kc, kh = jax.random.split(key, 4)
    params = init_params(kp, embed_dim=EMBED_DIM, d_model=D_MODEL,
                         hidden_dim=HIDDEN_DIM, num_classes=NUM_CLASSES,
                         max_len=MAX_LEN)
    E_a = jax.random.normal(ka, (B, EMBED_DIM), jnp.float32)
    E_c = jax.random.normal(kc, (B, EMBED_DIM), jnp.float32)
    E_h = jax.random.normal(kh, (B, EMBED_DIM), jnp.float32)

    logits = attention_based_model_forward(
        params, E_a, E_c, E_h, num_heads=NUM_HEADS,
        seq_len=SEQ_LEN, use_positional_encoding=True)
    logits = jax.block_until_ready(logits)

    ref = reference_forward(params, E_a, E_c, E_h, num_heads=NUM_HEADS,
                            seq_len=SEQ_LEN, use_positional_encoding=True)
    assert logits.shape == (B, NUM_CLASSES)
    err = float(jnp.max(jnp.abs(logits - ref)))
    assert jnp.allclose(logits, ref, atol=1e-4, rtol=1e-4), f"mismatch vs ref: {err}"
    print("KERNEL_OK")
</pallas_src>

<mosaic_0001>
module attributes {stable_mosaic.version = 11 : i64} {
  func.func @_proj_repeat_pe_kernel(%arg0: i32, %arg1: memref<2x32xf32, #tpu.memory_space<vmem>>, %arg2: memref<32x32xf32, #tpu.memory_space<vmem>>, %arg3: memref<1x32xf32, #tpu.memory_space<vmem>>, %arg4: memref<8x32xf32, #tpu.memory_space<vmem>>, %arg5: memref<2x5x32xf32, #tpu.memory_space<vmem>>) attributes {dimension_semantics = [#tpu.dimension_semantics<arbitrary>], iteration_bounds = array<i64: 1>, scalar_prefetch = 0 : i64, scratch_operands = 0 : i64, tpu.core_type = #tpu.core_type<tc>, window_params = [{pipeline_mode = #tpu.pipeline_mode<synchronous>, transform_indices = @transform_0, window_bounds = array<i64: 2, 32>}, {pipeline_mode = #tpu.pipeline_mode<synchronous>, transform_indices = @transform_1, window_bounds = array<i64: 32, 32>}, {pipeline_mode = #tpu.pipeline_mode<synchronous>, transform_indices = @transform_2, window_bounds = array<i64: 1, 32>}, {transform_indices = @transform_3, window_bounds = array<i64: 8, 32>}, {pipeline_mode = #tpu.pipeline_mode<synchronous>, transform_indices = @transform_4, window_bounds = array<i64: 2, 5, 32>}]} {
    %c0 = arith.constant 0 : index
    %c0_0 = arith.constant 0 : index
    %0 = vector.load %arg1[%c0, %c0_0] : memref<2x32xf32, #tpu.memory_space<vmem>>, vector<2x32xf32>
    %c0_1 = arith.constant 0 : index
    %c0_2 = arith.constant 0 : index
    %1 = vector.load %arg2[%c0_1, %c0_2] : memref<32x32xf32, #tpu.memory_space<vmem>>, vector<32x32xf32>
    %cst = arith.constant dense<0.000000e+00> : vector<2x32xf32>
    %2 = tpu.matmul %0, %1, %cst {dimension_numbers = #tpu.dot_dimension_numbers<[1], [0], [0], [1], [0, 0, 1, 1], [], []>} : vector<2x32xf32>, vector<32x32xf32>, vector<2x32xf32> -> vector<2x32xf32>
    %c0_3 = arith.constant 0 : index
    %c0_4 = arith.constant 0 : index
    %3 = vector.load %arg3[%c0_3, %c0_4] : memref<1x32xf32, #tpu.memory_space<vmem>>, vector<1x32xf32>
    %4 = vector.broadcast %3 : vector<1x32xf32> to vector<2x32xf32>
    %5 = arith.addf %2, %4 : vector<2x32xf32>
    %c0_5 = arith.constant 0 : index
    %c0_6 = arith.constant 0 : index
    %6 = vector.load %arg4[%c0_5, %c0_6] : memref<8x32xf32, #tpu.memory_space<vmem>>, vector<5x32xf32>
    %7 = vector.extract_strided_slice %5 {offsets = [0, 0], sizes = [1, 32], strides = [1, 1]} : vector<2x32xf32> to vector<1x32xf32>
    %8 = vector.broadcast %7 : vector<1x32xf32> to vector<5x32xf32>
    %9 = arith.addf %8, %6 : vector<5x32xf32>
    %c0_7 = arith.constant 0 : index
    %c0_8 = arith.constant 0 : index
    %c0_9 = arith.constant 0 : index
    %10 = vector.load %arg5[%c0_7, %c0_8, %c0_9] : memref<2x5x32xf32, #tpu.memory_space<vmem>>, vector<1x5x32xf32>
    %11 = vector.shape_cast %10 : vector<1x5x32xf32> to vector<5x32xf32>
    %12 = vector.shape_cast %9 : vector<5x32xf32> to vector<1x5x32xf32>
    tpu.vector_store %arg5[%c0_7, %c0_8, %c0_9], %12 {strides = array<i32>} : memref<2x5x32xf32, #tpu.memory_space<vmem>>, vector<1x5x32xf32>,
    %13 = vector.extract_strided_slice %5 {offsets = [1, 0], sizes = [1, 32], strides = [1, 1]} : vector<2x32xf32> to vector<1x32xf32>
    %14 = vector.broadcast %13 : vector<1x32xf32> to vector<5x32xf32>
    %15 = arith.addf %14, %6 : vector<5x32xf32>
    %c1 = arith.constant 1 : index
    %c0_10 = arith.constant 0 : index
    %c0_11 = arith.constant 0 : index
    %16 = vector.load %arg5[%c1, %c0_10, %c0_11] : memref<2x5x32xf32, #tpu.memory_space<vmem>>, vector<1x5x32xf32>
    %17 = vector.shape_cast %16 : vector<1x5x32xf32> to vector<5x32xf32>
    %18 = vector.shape_cast %15 : vector<5x32xf32> to vector<1x5x32xf32>
    tpu.vector_store %arg5[%c1, %c0_10, %c0_11], %18 {strides = array<i32>} : memref<2x5x32xf32, #tpu.memory_space<vmem>>, vector<1x5x32xf32>,
    return
  }
  func.func @transform_0(%arg0: i32) -> (i32, i32) {
    %c0_i32 = arith.constant 0 : i32
    %c0_i32_0 = arith.constant 0 : i32
    %c0_i32_1 = arith.constant 0 : i32
    return %c0_i32, %c0_i32_0 : i32, i32
  }
  func.func @transform_1(%arg0: i32) -> (i32, i32) {
    %c0_i32 = arith.constant 0 : i32
    %c0_i32_0 = arith.constant 0 : i32
    %c0_i32_1 = arith.constant 0 : i32
    return %c0_i32, %c0_i32_0 : i32, i32
  }
  func.func @transform_2(%arg0: i32) -> (i32, i32) {
    %c0_i32 = arith.constant 0 : i32
    %c0_i32_0 = arith.constant 0 : i32
    %c0_i32_1 = arith.constant 0 : i32
    return %c0_i32, %c0_i32_0 : i32, i32
  }
  func.func @transform_3(%arg0: i32) -> (i32, i32) {
    %c0_i32 = arith.constant 0 : i32
    %c0_i32_0 = arith.constant 0 : i32
    %c0_i32_1 = arith.constant 0 : i32
    return %c0_i32, %c0_i32_0 : i32, i32
  }
  func.func @transform_4(%arg0: i32) -> (i32, i32, i32) {
    %c0_i32 = arith.constant 0 : i32
    %c0_i32_0 = arith.constant 0 : i32
    %c0_i32_1 = arith.constant 0 : i32
    %c0_i32_2 = arith.constant 0 : i32
    return %c0_i32, %c0_i32_0, %c0_i32_1 : i32, i32, i32
  }
}

</mosaic_0001>

<bundles_post_ra>
// kernel: tpu_custom_call.1
= control target key start
LH: loop header
LB: loop body
LE: loop exit
PB: predicated region body
PF: predicated region fallthrough
CT: control target
= control target key end

     0   :  { %vm26_vm0 = vcmask 261120   ;;  %vm53_vm1 = vcmask 258048   ;;  %s118_s1 = inlined_call_operand.vmem [shape: f32[32,32], index: 1, kind: input, shape index: {}]   ;;  %s119_s2 = inlined_call_operand.vmem [shape: f32[1,32], index: 2, kind: input, shape index: {}]   ;;  %s120_s0 = inlined_call_operand.vmem [shape: f32[2,32], index: 0, kind: input, shape index: {}]   ;;  %s121_s3 = inlined_call_operand.vmem [shape: f32[64,32], index: 3, kind: input, shape index: {}]   ;;  %s122_s4 = inlined_call_operand.vmem [shape: f32[2,5,32], index: 4, kind: output, shape index: {}]  }
   0x1   :  { %v21_v0 = vld [vmem:[%s118_s1 + $0x18] sm:$0xff]  ;;  %v20_v1 = vld [vmem:[%s118_s1 + $0x10] sm:$0xff]  ;;  %v19_v2 = vld [vmem:[%s118_s1 + $0x8] sm:$0xff] }
   0x2   :  { %42 = vmatpush.msra.mxu0 %v21_v0  ;;  %v18_v3 = vld [vmem:[%s118_s1] sm:$0xff] }
   0x3   :  { %v17_v4 = vld [vmem:[%s120_s0] sm:$0x3] }
   0x4   :  { %43 = vmatpush.msra.mxu0 %v20_v1  ;;  %v65_v5 = vld [vmem:[%s119_s2] ss:$0 sm:$0xff] }
   0x5   :  { %v50_v8 = vld [vmem:[%s121_s3] sm:$0x1f] }
   0x6   :  { %44 = vmatpush.msra.mxu0 %v19_v2 }
   0x8   :  { %45 = vmatpush.msra.mxu0 %v18_v3 }
   0x9   :  { %63 = vmatmul.msk.f32.vlgmr.msra.gmra.mxu0 %vm26_vm0, %v17_v4 }
  0x86   :  { %v47_v6 = vpop.f32.mrf.mxu0 }
  0x87   :  { %v48_v7 = vadd.f32 %v65_v5, %v47_v6 }
  0x89   :  { %v51_v9 = vperm.slane %v48_v7, 0  ;;  %v55_v10 = vperm.slane %v48_v7, 1 }
  0x8b   :  { %v52_v11 = vadd.f32 %v51_v9, %v50_v8  ;;  %v56_v12 = vadd.f32 %v55_v10, %v50_v8 }
  0x8d   :  { %54 = vst.msk [vmem:[%s122_s4] sm:$0x1f] %vm53_vm1, %v52_v11 }
  0x8e   :  { %64 = vst.msk [vmem:[%s122_s4 + $0x8] sm:$0x1f] %vm53_vm1, %v56_v12 }

</bundles_post_ra>
